<compile_context>
chip_gen: v5e
topology: v5e:2x2
jax: 0.10.0
libtpu: 0.0.40
codegen_flags: <defaults>
</compile_context>

<pallas_src>
import functools

import numpy as np
import jax
import jax.numpy as jnp
from jax.experimental import pallas as pl
from jax.experimental.pallas import tpu as pltpu


_RESIDENT_CAP_BYTES = 16 * 1024 * 1024   # target for the per-step in+out(+f32 temp) block
_VMEM_LIMIT_MAX = 48 * 1024 * 1024       # < 64 MiB physical on v7x, fine on v5e/v6e


def _compiler_params(dims, resident_bytes):
    limit = int(min(max(2 * resident_bytes + (4 << 20), 16 << 20), _VMEM_LIMIT_MAX))
    return pltpu.CompilerParams(dimension_semantics=dims, vmem_limit_bytes=limit)


def _conv_sigmoid_gates(y, w, k):
    """k-tap 1-D conv across channels (zero padding) + sigmoid.

    y: (C, 1) f32 channel means (channels on sublanes); w: (k, 1) f32 taps.
    Matches PyTorch Conv1d(1, 1, k, padding=(k-1)//2, bias=False)
    cross-correlation.  k shifted multiply-adds -> VPU only, no MXU, no O(C^2).
    """
    C = y.shape[0]
    pad = (k - 1) // 2
    if pad > 0:
        zeros = jnp.zeros((pad, 1), jnp.float32)
        ypad = jnp.concatenate([zeros, y, zeros], axis=0)       # (C + 2*pad, 1)
    else:
        ypad = y
    z = ypad[0:C, :] * w[0:1, :]
    for i in range(1, k):
        z = z + ypad[i:i + C, :] * w[i:i + 1, :]
    return jax.nn.sigmoid(z)                                    # (C, 1) f32


def _eca_fused_kernel(w_ref, x_ref, o_ref):
    # w_ref: (k, 1) f32   x_ref/o_ref: (1, C, HW)
    x = x_ref[0]                                                # (C, HW)
    hw = x.shape[-1]
    sums = jnp.sum(x.astype(jnp.float32), axis=-1, keepdims=True)   # (C, 1) f32
    gates = _conv_sigmoid_gates(sums * (1.0 / hw), w_ref[...], w_ref.shape[0])
    o_ref[0] = (x * gates.astype(x.dtype)).astype(o_ref.dtype)


def _eca_pool_kernel(w_ref, x_ref, g_ref, *, hw_total, hw_tile, need_mask):
    # Phase A: accumulate per-channel spatial sums, then conv+sigmoid in finalize.
    h = pl.program_id(1)

    @pl.when(h == 0)
    def _init():
        g_ref[...] = jnp.zeros_like(g_ref)

    x = x_ref[0]                                                # (C, hw_tile)
    if need_mask:  # mask the padded tail of the last spatial tile
        pos = h * hw_tile + jax.lax.broadcasted_iota(jnp.int32, x.shape, 1)
        x = jnp.where(pos < hw_total, x, 0)
    g_ref[0] += jnp.sum(x.astype(jnp.float32), axis=-1, keepdims=True)

    @pl.when(h == pl.num_programs(1) - 1)
    def _finalize():
        means = g_ref[0] * (1.0 / hw_total)
        g_ref[0] = _conv_sigmoid_gates(means, w_ref[...], w_ref.shape[0])


def _eca_scale_kernel(g_ref, x_ref, o_ref):
    # Phase B: pure elementwise channel-wise rescale (memory bound).
    x = x_ref[0]                                                # (C, hw_tile)
    gates = g_ref[0]                                            # (C, 1) f32
    o_ref[0] = (x * gates.astype(x.dtype)).astype(o_ref.dtype)


def _pick_hw_tile(hw_total, per_lane_bytes, cap_bytes, max_hw_tile=None):
    cap_tile = 2048 if max_hw_tile is None else max_hw_tile
    cap_tile = max(128, (cap_tile // 128) * 128)
    budget_tile = (cap_bytes // max(per_lane_bytes, 1)) // 128 * 128
    t = max(128, min(cap_tile, budget_tile))
    if t >= hw_total:
        return int(hw_total)        # single full-width tile
    return int(t)                   # multiple of 128 -> lane-dense, unmasked stores


def eca_block(x, conv_w, *, force_two_phase=False, max_hw_tile=None):
    """ECA forward. x: (N, C, H, W) float32/bfloat16; conv_w: (1, 1, k) Conv1d weight."""
    N, C, H, W = x.shape
    HW = H * W
    k = int(conv_w.shape[-1])
    w = conv_w.reshape(k, 1).astype(jnp.float32)    # taps with channels on sublanes

    xr = x.reshape(N, C, HW)
    in_b = x.dtype.itemsize
    out_b = in_b

    # Resident bytes per grid step for the fused path (in + out + f32 pooling temp).
    resident_fused = C * HW * (in_b + out_b + 4)
    use_fused = (not force_two_phase) and resident_fused <= _RESIDENT_CAP_BYTES

    if use_fused:
        out = pl.pallas_call(
            _eca_fused_kernel,
            out_shape=jax.ShapeDtypeStruct((N, C, HW), x.dtype),
            grid_spec=pltpu.PrefetchScalarGridSpec(
                num_scalar_prefetch=0,
                grid=(N,),
                in_specs=[
                    pl.BlockSpec((k, 1), lambda n: (0, 0)),
                    pl.BlockSpec((1, C, HW), lambda n: (n, 0, 0)),
                ],
                out_specs=pl.BlockSpec((1, C, HW), lambda n: (n, 0, 0)),
            ),
            compiler_params=_compiler_params(("parallel",), resident_fused),
            cost_estimate=pl.CostEstimate(
                flops=2 * N * C * HW,
                transcendentals=N * C,
                bytes_accessed=N * C * HW * (in_b + out_b)),
        )(w, xr)
        return out.reshape(N, C, H, W)

    # ----------------------- two-phase path -----------------------
    hw_tile = _pick_hw_tile(HW, C * (in_b + out_b + 4), _RESIDENT_CAP_BYTES, max_hw_tile)
    n_hw = pl.cdiv(HW, hw_tile)
    need_mask = (HW % hw_tile) != 0

    # Phase A: pooled channel sums -> gates (N, C, 1) f32 (reduction axis last).
    resident_a = C * hw_tile * (in_b + 4) + C * 4
    pool_kernel = functools.partial(
        _eca_pool_kernel, hw_total=HW, hw_tile=hw_tile, need_mask=need_mask)
    gates = pl.pallas_call(
        pool_kernel,
        out_shape=jax.ShapeDtypeStruct((N, C, 1), jnp.float32),
        grid_spec=pltpu.PrefetchScalarGridSpec(
            num_scalar_prefetch=0,
            grid=(N, n_hw),
            in_specs=[
                pl.BlockSpec((k, 1), lambda n, h: (0, 0)),
                pl.BlockSpec((1, C, hw_tile), lambda n, h: (n, 0, h)),
            ],
            out_specs=pl.BlockSpec((1, C, 1), lambda n, h: (n, 0, 0)),
        ),
        compiler_params=_compiler_params(("parallel", "arbitrary"), resident_a),
        cost_estimate=pl.CostEstimate(
            flops=N * C * HW,
            transcendentals=N * C,
            bytes_accessed=N * C * HW * in_b + N * C * 4),
    )(w, xr)

    # Phase B: elementwise rescale; fully parallel grid (fills both v7x cores).
    resident_b = C * hw_tile * (in_b + out_b) + C * 4
    out = pl.pallas_call(
        _eca_scale_kernel,
        out_shape=jax.ShapeDtypeStruct((N, C, HW), x.dtype),
        grid_spec=pltpu.PrefetchScalarGridSpec(
            num_scalar_prefetch=0,
            grid=(N, n_hw),
            in_specs=[
                pl.BlockSpec((1, C, 1), lambda n, h: (n, 0, 0)),
                pl.BlockSpec((1, C, hw_tile), lambda n, h: (n, 0, h)),
            ],
            out_specs=pl.BlockSpec((1, C, hw_tile), lambda n, h: (n, 0, h)),
        ),
        compiler_params=_compiler_params(("parallel", "parallel"), resident_b),
        cost_estimate=pl.CostEstimate(
            flops=N * C * HW,
            transcendentals=0,
            bytes_accessed=N * C * HW * (in_b + out_b) + N * C * 4),
    )(gates, xr)
    return out.reshape(N, C, H, W)


if __name__ == "__main__":
    # Mirror ECA_Block.__init__(channel=8, gamma=2, b=1) -> t = 2 -> k = 3
    channel, gamma, b = 8, 2, 1
    t = int(abs((np.log2(channel) + b) / gamma))
    k = t if t % 2 != 0 else t + 1

    key = jax.random.PRNGKey(0)
    kx, kw, kx2 = jax.random.split(key, 3)
    x = jax.random.normal(kx, (2, channel, 16, 16), dtype=jnp.float32)
    conv_w = 0.5 * jax.random.normal(kw, (1, 1, k), dtype=jnp.float32)

    def reference(xv, wv):
        _, C, _, _ = xv.shape
        pad = (k - 1) // 2
        y = jnp.mean(xv.astype(jnp.float32), axis=(2, 3))              # (N, C)
        ypad = jnp.pad(y, ((0, 0), (pad, pad)))
        w_ = wv.reshape(k)
        z = sum(w_[i] * ypad[:, i:i + C] for i in range(k))
        return xv.astype(jnp.float32) * jax.nn.sigmoid(z)[:, :, None, None]

    # 1) fused single-pass path (the (C, HW) slab easily fits VMEM).
    out = jax.block_until_ready(eca_block(x, conv_w))
    np.testing.assert_allclose(np.asarray(out), np.asarray(reference(x, conv_w)),
                               rtol=1e-5, atol=1e-5)

    # 2) two-phase path with a masked spatial tail (HW = 13*13 = 169, tile 128).
    x2 = jax.random.normal(kx2, (2, channel, 13, 13), dtype=jnp.float32)
    out2 = jax.block_until_ready(
        eca_block(x2, conv_w, force_two_phase=True, max_hw_tile=128))
    np.testing.assert_allclose(np.asarray(out2), np.asarray(reference(x2, conv_w)),
                               rtol=1e-5, atol=1e-5)

    # 3) bf16 I/O (pool / conv / sigmoid stay in f32 inside the kernel).
    xb = x.astype(jnp.bfloat16)
    outb = jax.block_until_ready(eca_block(xb, conv_w))
    np.testing.assert_allclose(np.asarray(outb.astype(jnp.float32)),
                               np.asarray(reference(xb, conv_w)),
                               rtol=8e-2, atol=8e-2)

    print("KERNEL_OK")
</pallas_src>

<mosaic_0001>
module attributes {stable_mosaic.version = 11 : i64} {
  func.func @_eca_fused_kernel(%arg0: i32, %arg1: memref<3x1xf32, #tpu.memory_space<vmem>>, %arg2: memref<1x8x256xf32, #tpu.memory_space<vmem>>, %arg3: memref<1x8x256xf32, #tpu.memory_space<vmem>>) attributes {dimension_semantics = [#tpu.dimension_semantics<parallel>], iteration_bounds = array<i64: 2>, scalar_prefetch = 0 : i64, scratch_operands = 0 : i64, tpu.core_type = #tpu.core_type<tc>, window_params = [{pipeline_mode = #tpu.pipeline_mode<synchronous>, transform_indices = @transform_0, window_bounds = array<i64: 3, 1>}, {transform_indices = @transform_1, window_bounds = array<i64: 1, 8, 256>}, {transform_indices = @transform_2, window_bounds = array<i64: 1, 8, 256>}]} {
    %c0 = arith.constant 0 : index
    %c0_0 = arith.constant 0 : index
    %c0_1 = arith.constant 0 : index
    %0 = vector.load %arg2[%c0, %c0_0, %c0_1] : memref<1x8x256xf32, #tpu.memory_space<vmem>>, vector<1x8x256xf32>
    %1 = vector.shape_cast %0 : vector<1x8x256xf32> to vector<8x256xf32>
    %cst = arith.constant dense<0.000000e+00> : vector<8xf32>
    %2 = vector.multi_reduction <add>, %1, %cst [1] : vector<8x256xf32> to vector<8xf32>
    %3 = vector.shape_cast %2 : vector<8xf32> to vector<8x1xf32>
    %cst_2 = arith.constant 3.906250e-03 : f32
    %4 = vector.broadcast %cst_2 : f32 to vector<8x1xf32>
    %5 = arith.mulf %3, %4 : vector<8x1xf32>
    %c0_3 = arith.constant 0 : index
    %c0_4 = arith.constant 0 : index
    %6 = vector.load %arg1[%c0_3, %c0_4] : memref<3x1xf32, #tpu.memory_space<vmem>>, vector<3x1xf32>
    %cst_5 = arith.constant 0.000000e+00 : f32
    %7 = vector.broadcast %cst_5 : f32 to vector<1x1xf32>
    %8 = tpu.concatenate %7, %5, %7 in 0 : vector<1x1xf32>, vector<8x1xf32>, vector<1x1xf32> -> vector<10x1xf32>
    %9 = vector.extract_strided_slice %8 {offsets = [0, 0], sizes = [8, 1], strides = [1, 1]} : vector<10x1xf32> to vector<8x1xf32>
    %10 = vector.extract_strided_slice %6 {offsets = [0, 0], sizes = [1, 1], strides = [1, 1]} : vector<3x1xf32> to vector<1x1xf32>
    %11 = vector.broadcast %10 : vector<1x1xf32> to vector<8x1xf32>
    %12 = arith.mulf %9, %11 : vector<8x1xf32>
    %13 = vector.extract_strided_slice %8 {offsets = [1, 0], sizes = [8, 1], strides = [1, 1]} : vector<10x1xf32> to vector<8x1xf32>
    %14 = vector.extract_strided_slice %6 {offsets = [1, 0], sizes = [1, 1], strides = [1, 1]} : vector<3x1xf32> to vector<1x1xf32>
    %15 = vector.broadcast %14 : vector<1x1xf32> to vector<8x1xf32>
    %16 = arith.mulf %13, %15 : vector<8x1xf32>
    %17 = arith.addf %12, %16 : vector<8x1xf32>
    %18 = vector.extract_strided_slice %8 {offsets = [2, 0], sizes = [8, 1], strides = [1, 1]} : vector<10x1xf32> to vector<8x1xf32>
    %19 = vector.extract_strided_slice %6 {offsets = [2, 0], sizes = [1, 1], strides = [1, 1]} : vector<3x1xf32> to vector<1x1xf32>
    %20 = vector.broadcast %19 : vector<1x1xf32> to vector<8x1xf32>
    %21 = arith.mulf %18, %20 : vector<8x1xf32>
    %22 = arith.addf %17, %21 : vector<8x1xf32>
    %23 = arith.negf %22 : vector<8x1xf32>
    %24 = math.exp %23 : vector<8x1xf32>
    %cst_6 = arith.constant 1.000000e+00 : f32
    %25 = vector.broadcast %cst_6 : f32 to vector<8x1xf32>
    %26 = arith.addf %25, %24 : vector<8x1xf32>
    %27 = arith.divf %25, %26 : vector<8x1xf32>
    %28 = vector.broadcast %27 : vector<8x1xf32> to vector<8x256xf32>
    %29 = arith.mulf %1, %28 : vector<8x256xf32>
    %c0_7 = arith.constant 0 : index
    %c0_8 = arith.constant 0 : index
    %c0_9 = arith.constant 0 : index
    %30 = vector.load %arg3[%c0_7, %c0_8, %c0_9] : memref<1x8x256xf32, #tpu.memory_space<vmem>>, vector<1x8x256xf32>
    %31 = vector.shape_cast %30 : vector<1x8x256xf32> to vector<8x256xf32>
    %32 = vector.shape_cast %29 : vector<8x256xf32> to vector<1x8x256xf32>
    tpu.vector_store %arg3[%c0_7, %c0_8, %c0_9], %32 {strides = array<i32>} : memref<1x8x256xf32, #tpu.memory_space<vmem>>, vector<1x8x256xf32>,
    return
  }
  func.func @transform_0(%arg0: i32) -> (i32, i32) {
    %c0_i32 = arith.constant 0 : i32
    %c0_i32_0 = arith.constant 0 : i32
    %c0_i32_1 = arith.constant 0 : i32
    return %c0_i32, %c0_i32_0 : i32, i32
  }
  func.func @transform_1(%arg0: i32) -> (i32, i32, i32) {
    %c0_i32 = arith.constant 0 : i32
    %c0_i32_0 = arith.constant 0 : i32
    %c0_i32_1 = arith.constant 0 : i32
    return %arg0, %c0_i32, %c0_i32_0 : i32, i32, i32
  }
  func.func @transform_2(%arg0: i32) -> (i32, i32, i32) {
    %c0_i32 = arith.constant 0 : i32
    %c0_i32_0 = arith.constant 0 : i32
    %c0_i32_1 = arith.constant 0 : i32
    return %arg0, %c0_i32, %c0_i32_0 : i32, i32, i32
  }
}

</mosaic_0001>

<bundles_post_ra>
// kernel: tpu_custom_call.1
= control target key start
LH: loop header
LB: loop body
LE: loop exit
PB: predicated region body
PF: predicated region fallthrough
CT: control target
= control target key end

     0   :  { %7 = vsyncpa [#allocation3], 0  ;;  %s631_s0 = inlined_call_operand.vmem [shape: f32[3,1], index: 0, kind: input, shape index: {}]   ;;  %s632_s1 = inlined_call_operand.hbm [shape: f32[2,8,256], index: 1, kind: input, shape index: {}]   ;;  %s633_s2 = inlined_call_operand.hbm [shape: f32[2,8,256], index: 2, kind: output, shape index: {}]  }
   0x1   :  { %9 = vsyncpa [#allocation3 + $0x1], 0 }
   0x2   :  { %10 = vsyncpa [#allocation4], 0 }
   0x3   :  { %12 = vsyncpa [#allocation4 + $0x1], 0  ;;  %s497_s9 = smov 0   ;;  %s499_s10 = smov 0  }
   0x4   :  { %s501_s11 = smov 0   ;;  %s503_s12 = smov 0  }
   0x5 LB: > { %s518_s13 = sadd.s32 4294967295, %s479_s12   ;;  %s314_s14 = sadd.s32 4294967294, %s479_s12   ;;  %s479_s12 = sphi %s503_s12, %s643_s12   ;;  %s475_s11 = sphi %s501_s11, %s642_s11   ;;  %s471_s10 = sphi %s499_s10, %s641_s10   ;;  %s467_s9 = sphi %s497_s9, %s640_s9  }
   0x6   : > { %s522_s15 = sadd.s32 1, %s479_s12   ;;  %s46_s16 = sadd.s32 1, %s475_s11 }
   0x7   : > { %s43_s17 = ssub.s32 %s479_s12, %s522_s15  ;;  %p53_p0 = scmp.ne.s32.totalorder %s475_s11, %s471_s10 }
   0x8   : > { %p44_p1 = scmp.eq.s32.totalorder %s43_s17, 0  ;;  %p54_p2 = scmp.eq.s32.totalorder %s479_s12, 0 }
   0x9   : > { %p59_p3 = scmp.ne.s32.totalorder %s471_s10, %s467_s9  ;;  %p60_p4 = scmp.eq.s32.totalorder %s518_s13, 0 }
   0xa   : > { %s534_s18 = scalar_select %p44_p1, %s475_s11, %s46_s16  }
   0xb   : > { %p536_p5 = por %p54_p2, %p53_p0  ;;  %p540_p6 = por %p60_p4, %p59_p3 }
   0xc   : > { %p83_p7 = scmp.eq.s32.totalorder %s518_s13, 1  ;;  %p89_p8 = scmp.eq.s32.totalorder %s314_s14, 1 }
   0xd   : > { %p343_p10 = scmp.lt.s32.totalorder %s479_s12, 2  ;;  %s112_s23 = sand.u32 1, %s475_s11  }
   0xe   : > { %p547_p11 = por %p83_p7, %p53_p0  ;;  %p551_p12 = por %p89_p8, %p59_p3 }
   0xf   : > { %s329_s24 = sshll.u32 %s479_s12, 4  ;;  %s317_s25 = sshll.u32 %s112_s23, 4 }
  0x10   : > { %s121_s28 = scalar_lea.hbm %s632_s1, %s329_s24  ;;  %s116_s30 = scalar_lea.vmem [#allocation2], %s317_s25 }
  0x11   : > { %s123_s29 = sshll.u32 %s121_s28, 4  ;;  %s125_s3 = sshll.u32 %s116_s30, 4  ;;  %s124_s29 = int_to_ptr.hbm [resolvable:$true] %s123_s29  ;;  %s126_s3 = int_to_ptr.vmem [resolvable:$true] %s125_s3 }
  0x12   : > { %p562_p13 = pnand %p343_p10, %p536_p5  ;;  %p320_p0 = scmp.ge.s32.totalorder %s479_s12, 1 }
  0x13   : > { %p130_p1 = scmp.lt.s32.totalorder %s479_s12, 3  ;;  %s113_s5 = scalar_lea.sflag [#allocation3], %s112_s23 }
  0x14   : > { %s383_s6 = sshra.s32 %s124_s29, 4  ;;  %p387_p3 = pneg %p562_p13  ;;  %s384_s6 = int_to_ptr.hbm [resolvable:$true] %s383_s6 }
  0x15   : > { %s385_s7 = scalar_lea.hbm %s384_s6, 16  ;;  %s390_s16 = scalar_lea.hbm %s632_s1, 32 }
  0x16   : > { %p386_p2 = scmp.ne.s32.totalorder %s384_s6, %s385_s7  ;;  %p391_p5 = scmp.lt.s32.totalorder %s384_s6, %s632_s1 }
  0x17   : > { %p392_p8 = scmp.lt.s32.totalorder %s390_s16, %s385_s7 }
  0x18   : > { %p388_p4 = pnand %p387_p3, %p386_p2 }
  0x19   : > { %p393_p10 = por %p392_p8, %p391_p5 }
  0x1a   : > { %p389_p7 = pneg %p388_p4 }
  0x1c   : > { %p394_p9 = pnand %p393_p10, %p389_p7 }
  0x1e   : > { %397 = shalt.err (!%p394_p9)
}
  0x1f   : > { %338 = dma.hbm_to_vmem [thread:$0]  (!%p562_p13), %s124_s29, 256, %s126_s3, %s113_s5  }
  0x20   : > { %p131_p2 = pnand %p320_p0, %p130_p1 }
  0x21   : > { %s583_s23 = sand.u32 (!%p131_p2), 1, %s471_s10  }
  0x22   : > { %134 = sbr.rel (%p131_p2) target bundleno = 322 (0x142), region = 28  ;;  %s321_s24 = sshll.u32 (!%p131_p2), %s583_s23, 4 }
  0x23   : > { %s137_s25 = scalar_lea.sflag (!%p131_p2), [#allocation3], %s583_s23  ;;  %s140_s26 = scalar_lea.vmem (!%p131_p2), [#allocation2], %s321_s24 }
  0x27   : > { %458 = dma.done.wait (%p540_p6), %s137_s25, 256  }
  0x28   : > { %460 = vsyncadd (%p540_p6), %s137_s25, 4294967040  ;;  %v162_v0 = vld [vmem:[%s140_s26] sm:$0xff]  ;;  %v163_v1 = vld [vmem:[%s140_s26 + $0x8] sm:$0xff]  ;;  %v481_v3 = vmov 0   ;;  %vm172_vm0 = vcmask 1040384   ;;  %vm182_vm1 = vcmask 1046528  }
  0x29   : > { %v164_v2 = vadd.f32 %v163_v1, %v162_v0  ;;  %378 = vset.pattern.permute.xlu0 %v481_v3  ;;  %v168_v4 = vld [vmem:[%s631_s0] sm:$0x7]  ;;  %vm193_vm2 = vcmask 1045504   ;;  %s330_s20 = sshll.u32 %s518_s13, 4  ;;  %s161_s4 = scalar_lea.vmem [#allocation5], %s321_s24 }
  0x2a   : > { %v177_v7 = vperm.slane %v168_v4, 1  ;;  %v188_v8 = vperm.slane %v168_v4, 2  ;;  %v175_v10 = vperm.slane %v168_v4, 0  ;;  %s239_s3 = scalar_lea.hbm %s633_s2, %s330_s20  ;;  %s241_s5 = sshll.u32 %s161_s4, 4  ;;  %s242_s5 = int_to_ptr.vmem [resolvable:$true] %s241_s5 }
  0x2b   : > { %165 = vadd.xlane.f32.xlu0 %v164_v2  ;;  %s243_s6 = sshll.u32 %s239_s3, 4  ;;  %s228_s7 = scalar_lea.sflag [#allocation4], %s583_s23  ;;  %s244_s6 = int_to_ptr.hbm [resolvable:$true] %s243_s6 }
  0x2c   : > { %s427_s8 = sshra.s32 %s244_s6, 4  ;;  %s433_s17 = scalar_lea.hbm %s633_s2, 32  ;;  %s428_s8 = int_to_ptr.hbm [resolvable:$true] %s427_s8 }
  0x2d   : > { %s429_s13 = scalar_lea.hbm %s428_s8, 16  ;;  %p434_p0 = scmp.lt.s32.totalorder %s428_s8, %s633_s2 }
  0x2e   : > { %p430_p6 = scmp.ne.s32.totalorder %s428_s8, %s429_s13  ;;  %p435_p1 = scmp.lt.s32.totalorder %s433_s17, %s429_s13 }
  0x30   : > { %p431_p9 = pnand %p430_p6, %p547_p11  ;;  %p436_p3 = por %p435_p1, %p434_p0 }
  0x32   : > { %p432_p13 = pneg %p431_p9 }
  0x34   : > { %p437_p4 = pnand %p436_p3, %p432_p13 }
  0x9e   : > { %v166_v5 = vpop.xlane.xlu0 %165 }
  0x9f   : > { %v167_v6 = vmul.f32 0.00390625, %v166_v5 }
  0xa1   : > { %v170_v9 = vrot.slane %v167_v6, 7 }
  0xa3   : > { %v173_v11 = vsel %vm172_vm0, 0.0, %v170_v9  ;;  %v174_v12 = vsel %vm172_vm0, %v170_v9, 0.0 }
  0xa4   : > { %v178_v13 = vmul.f32 %v177_v7, %v173_v11  ;;  %v179_v14 = vmul.f32 %v177_v7, %v174_v12  ;;  %v189_v15 = vmul.f32 %v188_v8, %v173_v11  ;;  %v190_v16 = vmul.f32 %v188_v8, %v174_v12 }
  0xa5   : > { %v176_v20 = vmul.f32 %v175_v10, %v173_v11 }
  0xa6   : > { %v183_v17 = vrot.slane %v178_v13, 1  ;;  %v184_v18 = vrot.slane %v179_v14, 1  ;;  %v194_v19 = vrot.slane %v189_v15, 2  ;;  %v195_v21 = vrot.slane %v190_v16, 2 }
  0xa8   : > { %v185_v22 = vsel %vm182_vm1, %v183_v17, %v184_v18  ;;  %v196_v24 = vsel %vm193_vm2, %v194_v19, %v195_v21 }
  0xa9   : > { %v187_v23 = vadd.f32 %v185_v22, %v176_v20 }
  0xab   : > { %v198_v25 = vadd.f32 %v196_v24, %v187_v23 }
  0xad   : > { %v323_v26 = vmul.f32 -1.442695, %v198_v25 }
  0xaf   : > { %379 = vpow2.f32 %v323_v26 }
  0xb5   : > { %v380_v27 = vpop.eup %379 }
  0xb6   : > { %v202_v28 = vadd.f32 1.0, %v380_v27 }
  0xb8   : > { %381 = vrcp.f32 %v202_v28  ;;  %v214_v32 = vand.u32 2147483648, %v202_v28  ;;  %v212_v34 = vand.u32 2147483647, %v202_v28  ;;  %vm208_vm4 = vweird.f32 %v202_v28 }
  0xba   : > { %v215_v36 = vor.u32 1.1754944e-38, %v214_v32  ;;  %vm213_vm6 = vcmp.eq.f32.partialorder %v212_v34, 8.507059e+37 }
  0xbe   : > { %v382_v29 = vpop.eup %381 }
  0xbf   : > { %v204_v30 = vmul.f32 %v382_v29, %v202_v28  ;;  %vm209_vm3 = vweird.f32 %v382_v29 }
  0xc0   : > { %vm210_vm5 = vmor %vm208_vm4, %vm209_vm3 }
  0xc1   : > { %v205_v31 = vsub.f32 1.0, %v204_v30 }
  0xc3   : > { %v206_v33 = vmul.f32 %v382_v29, %v205_v31 }
  0xc5   : > { %v207_v35 = vadd.f32 %v382_v29, %v206_v33 }
  0xc7   : > { %v211_v37 = vsel %vm210_vm5, %v382_v29, %v207_v35 }
  0xc8   : > { %v216_v38 = vsel %vm213_vm6, %v215_v36, %v211_v37 }
  0xc9   : > { %220 = vperm.xlu0 %378, %v216_v38  }
 0x13b   : > { %v221_v39 = vpop.permute.xlu0 %220 }
 0x13c   : > { %v223_v40 = vmul.f32 %v221_v39, %v162_v0  ;;  %v224_v41 = vmul.f32 %v221_v39, %v163_v1 }
 0x13e   : > { %225 = vst [vmem:[%s161_s4] sm:$0xff] %v223_v40 }
 0x13f   : > { %226 = vst [vmem:[%s161_s4 + $0x8] sm:$0xff] %v224_v41 }
 0x140   : > { %440 = shalt.err (!%p437_p4)
}
 0x141   : > { %333 = dma.vmem_to_hbm [thread:$0]  (%p547_p11), %s242_s5, 256, %s244_s6, %s228_s7  }
 0x142 PF: > { %s255_s23 = sand.u32 1, %s467_s9   ;;  %p639_p7 = scmp.ge.s32.totalorder %s479_s12, 2 }
 0x143   : > { %s256_s25 = scalar_lea.sflag [#allocation4], %s255_s23 }
 0x144   : > { %p340_p5 = pnand %p639_p7, %p551_p12 }
 0x146   : > { %p341_p8 = pneg %p340_p5 }
 0x148   : > { %462 = dma.done.wait (%p341_p8), %s256_s25, 256  }
 0x149   : > { %464 = vsyncadd (%p341_p8), %s256_s25, 4294967040  ;;  %p15_p10 = scmp.ge.s32.totalorder %s522_s15, 4   ;;  %s640_s9 = smov %s471_s10 }
 0x14a   : > { %s641_s10 = smov %s475_s11  ;;  %s642_s11 = smov %s534_s18 }
 0x14b   : > { %s643_s12 = smov %s522_s15  ;;  %17 = sbr.rel (!%p15_p10) target bundleno = 5 (0x5), region = 73 }
 0x150   :  { %262 = vsyncpa [#allocation3], 1 }
 0x151   :  { %264 = vsyncpa [#allocation3 + $0x1], 1 }
 0x152   :  { %265 = vsyncpa [#allocation4], 1 }
 0x153   :  { %267 = vsyncpa [#allocation4 + $0x1], 1 }

</bundles_post_ra>
